<compile_context>
chip_gen: v6e
topology: v6e:2x2x1
jax: 0.10.0
libtpu: 0.0.40
codegen_flags: <defaults>
</compile_context>

<pallas_src>
import functools

import jax
import jax.numpy as jnp
from jax.experimental import pallas as pl
from jax.experimental.pallas import tpu as pltpu


def _model_kernel(x_ref, g_ref, w1m_ref, b1_ref, w2_ref, b2_ref, w3_ref, b3_ref,
                  o_ref, acc_ref, *, inv_spatial):
    s_idx = pl.program_id(1)

    # ---- lane-blocked partial sums: only (TR,128) VPU adds + unmasked stores
    #      per spatial step; no per-step XLU cross-lane reduce. ----
    x = x_ref[...]                                          # (TR, ST)
    part = x[:, 0:128]
    for k in range(1, x.shape[1] // 128):                   # static unroll
        part = part + x[:, k * 128:(k + 1) * 128]

    @pl.when(s_idx == 0)
    def _init():
        acc_ref[...] = jnp.zeros_like(acc_ref)

    acc_ref[...] += part

    # ---- last spatial step: finish the mean + run the whole classifier ----
    @pl.when(s_idx == pl.num_programs(1) - 1)
    def _finalize():
        # (TR, 1) pooled means; zero-padded columns never change the sum.
        sums = jnp.sum(acc_ref[...], axis=-1, keepdims=True) * inv_spatial
        # fc1 fused with the (TR,1)->(TN,C) un-flatten (constants precomputed
        # in the wrapper, no in-kernel iota/indicator construction):
        #   g[p, r]   = 1 iff r // C == p
        #   w1m[r, :] = w1[r % C, :]
        #   h[p, :]   = sum_r g[p,r] * sums[r] * w1m[r,:] + b1 = pooled[p,:] @ w1 + b1
        h = jnp.dot(g_ref[...], sums * w1m_ref[...],
                    preferred_element_type=jnp.float32,
                    precision=jax.lax.Precision.HIGHEST) + b1_ref[...]
        h = jnp.maximum(h, 0.0)                 # relu1  (dropout1: eval = id)
        h = jnp.dot(h, w2_ref[...],
                    preferred_element_type=jnp.float32,
                    precision=jax.lax.Precision.HIGHEST) + b2_ref[...]
        h = jnp.maximum(h, 0.0)                 # relu2  (dropout2: eval = id)
        o_ref[...] = jnp.dot(h, w3_ref[...],
                             preferred_element_type=jnp.float32,
                             precision=jax.lax.Precision.HIGHEST) + b3_ref[...]


def _tile_budget_bytes():
    """Per-buffer x-tile budget, sized per TPU generation."""
    try:
        vmem_cap = int(pltpu.get_tpu_info().vmem_capacity_bytes)
    except Exception:                      # interpret mode / API drift
        vmem_cap = 128 * 1024 * 1024
    if vmem_cap >= 100 * 1024 * 1024:      # v5e / v6e: 128 MiB physical VMEM
        return 12 * 1024 * 1024
    return 8 * 1024 * 1024                 # v7x: 64 MiB per TensorCore


def _pick_batch_tile(n, c, budget_bytes):
    """TN (batch rows per tile); row tile = TN*C over the packed (N*C, S) slab."""
    cands = [t for t in range(8, min(n, 256) + 1, 8) if n % t == 0]
    if not cands:
        return n                                   # single tile: block == full dim
    max_rows = max(8 * c, budget_bytes // (4 * 512))   # keep >=512-lane strips
    fits = [t for t in cands if t * c <= max_rows]
    cands = fits or [cands[0]]
    tn = max(cands)
    if n >= 16:                                    # >=2 parallel blocks -> both v7x TCs
        halves = [t for t in cands if t <= n // 2]
        if halves:
            tn = max(halves)
    return tn


def _pick_spatial_tile(s, row_tile, budget_bytes):
    """Lane tile: multiple of 128; whole (padded) S when it fits the budget."""
    s_pad128 = pl.cdiv(s, 128) * 128
    lane_cap = (budget_bytes // (4 * row_tile)) // 128 * 128
    lane_cap = max(512, min(lane_cap, 32768))      # >=2KB/row DMA, bounded unroll
    return min(s_pad128, lane_cap)


def model_forward(x_nchw, params, *, row_tile=None, spatial_tile=None):
    """x_nchw: (N, C, H, W) float32.  Returns (N, num_classes) float32 logits."""
    n, c, h, w = x_nchw.shape
    s = h * w
    w1, b1, w2, b2, w3, b3 = params
    assert w1.shape[0] == c, "conv_dim must equal channel count (features=Identity)"
    fc_dim = w1.shape[1]
    num_classes = w3.shape[1]

    weight_bytes = sum(int(p.size) * 4 for p in (w1, b1, w2, b2, w3, b3))
    # Weights stay resident; keep their (double-buffered) bytes out of the
    # x-tile budget.  TODO(synk): pl.Buffered(1) on the weight specs for huge fc_dim.
    budget = max(2 * 1024 * 1024, _tile_budget_bytes() - 2 * weight_bytes)

    if row_tile is None:
        row_tile = _pick_batch_tile(n, c, budget) * c
    if spatial_tile is None:
        spatial_tile = _pick_spatial_tile(s, row_tile, budget)

    assert row_tile % c == 0 and (n * c) % row_tile == 0, "bad row tile"
    assert spatial_tile % 128 == 0, "spatial tile must be a multiple of 128"
    batch_tile = row_tile // c

    # features = Identity; pack (N, C) onto sublanes -> (N*C, S) (free reshape);
    # zero-pad S to a multiple of the lane tile (zeros don't change the pooled
    # sum; the mean divides by the true S) -> lane-aligned, unmasked loads.
    s_pad = pl.cdiv(s, spatial_tile) * spatial_tile
    x = x_nchw.reshape(n * c, s).astype(jnp.float32)
    # TODO(synk): optional bf16 streaming of x (~2x on this HBM-bound kernel);
    # kept f32 to match the f32 PyTorch module exactly.
    if s_pad != s:
        x = jnp.pad(x, ((0, 0), (0, s_pad - s)))

    # Tile-local constants fusing fc1 with the row -> (batch, channel) un-flatten.
    gmat = (jnp.arange(row_tile)[None, :] // c
            == jnp.arange(batch_tile)[:, None]).astype(jnp.float32)   # (TN, TR)
    w1m = jnp.tile(w1, (batch_tile, 1))                                # (TR, fc_dim)

    grid = ((n * c) // row_tile, s_pad // spatial_tile)
    const = lambda i, j: (0, 0)          # resident blocks, fetched once

    kernel = functools.partial(_model_kernel, inv_spatial=1.0 / float(s))

    resident_bytes = 2 * (weight_bytes + (int(gmat.size) + int(w1m.size)) * 4)
    need = (2 * row_tile * spatial_tile * 4          # x, double-buffered
            + 2 * batch_tile * num_classes * 4       # out
            + resident_bytes                         # params + fused constants
            + row_tile * 128 * 4)                    # accumulator scratch
    vmem_limit = int(max(need + 2 * 1024 * 1024, 8 * 1024 * 1024))

    cost = pl.CostEstimate(
        flops=int(n * c * s
                  + 2 * n * (c * fc_dim + fc_dim * fc_dim + fc_dim * num_classes)),
        transcendentals=0,
        bytes_accessed=int(x.size * 4 + weight_bytes + n * num_classes * 4),
    )

    # TODO(synk): for very large N, pad num_classes to 128 (lane-dense stores)
    # and slice in the wrapper; negligible while num_classes == 10.
    out = pl.pallas_call(
        kernel,
        out_shape=jax.ShapeDtypeStruct((n, num_classes), jnp.float32),
        grid_spec=pltpu.PrefetchScalarGridSpec(
            num_scalar_prefetch=0,
            grid=grid,
            in_specs=[
                pl.BlockSpec((row_tile, spatial_tile), lambda i, j: (i, j)),
                pl.BlockSpec(gmat.shape, const),
                pl.BlockSpec(w1m.shape, const),
                pl.BlockSpec(b1.shape, const),
                pl.BlockSpec(w2.shape, const),
                pl.BlockSpec(b2.shape, const),
                pl.BlockSpec(w3.shape, const),
                pl.BlockSpec(b3.shape, const),
            ],
            out_specs=pl.BlockSpec((batch_tile, num_classes), lambda i, j: (i, 0)),
            scratch_shapes=[pltpu.VMEM((row_tile, 128), jnp.float32)],
        ),
        compiler_params=pltpu.CompilerParams(
            dimension_semantics=("parallel", "arbitrary"),
            vmem_limit_bytes=vmem_limit,
        ),
        cost_estimate=cost,
    )(x, gmat, w1m, b1, w2, b2, w3, b3)
    return out


def init_params(key, conv_dim, fc_dim, num_classes):
    """Deterministic init mimicking nn.Linear (uniform +-1/sqrt(fan_in)).
    Weights stored as (in_features, out_features) so the kernel does x @ W."""
    ks = jax.random.split(key, 6)

    def linear(kw, kb, fan_in, fan_out):
        bound = 1.0 / jnp.sqrt(fan_in)
        wgt = jax.random.uniform(kw, (fan_in, fan_out), jnp.float32, -bound, bound)
        bias = jax.random.uniform(kb, (1, fan_out), jnp.float32, -bound, bound)
        return wgt, bias

    w1, b1 = linear(ks[0], ks[1], conv_dim, fc_dim)
    w2, b2 = linear(ks[2], ks[3], fc_dim, fc_dim)
    w3, b3 = linear(ks[4], ks[5], fc_dim, num_classes)
    return (w1, b1, w2, b2, w3, b3)


def reference_forward(x_nchw, params):
    """Pure-JAX reference of the PyTorch forward (eval mode)."""
    w1, b1, w2, b2, w3, b3 = params
    pooled = jnp.mean(x_nchw.astype(jnp.float32), axis=(2, 3))  # (N, C)
    h = jnp.maximum(pooled @ w1 + b1, 0.0)
    h = jnp.maximum(h @ w2 + b2, 0.0)
    return h @ w3 + b3


if __name__ == "__main__":
    N, C, H, W = 16, 4, 16, 16
    fc_dim, num_classes = 32, 10

    key = jax.random.PRNGKey(0)
    kx, kp = jax.random.split(key)
    x = jax.random.normal(kx, (N, C, H, W), jnp.float32)
    params = init_params(kp, conv_dim=C, fc_dim=fc_dim, num_classes=num_classes)

    ref = reference_forward(x, params)

    # 1) auto tiling: 2 parallel batch tiles, single spatial step.
    out_auto = jax.block_until_ready(model_forward(x, params))
    # 2) forced small tiles: exercises the multi-step spatial reduction path
    #    (grid (2, 2): accumulator init / accumulate / finalize).
    out_small = jax.block_until_ready(
        model_forward(x, params, row_tile=8 * C, spatial_tile=128))

    for out in (out_auto, out_small):
        assert out.shape == (N, num_classes)
        assert jnp.allclose(out, ref, atol=1e-4, rtol=1e-4), "mismatch vs reference"

    print("KERNEL_OK")
</pallas_src>

<mosaic_0001>
module attributes {stable_mosaic.version = 11 : i64} {
  func.func @_model_kernel(%arg0: i32, %arg1: i32, %arg2: memref<32x256xf32, #tpu.memory_space<vmem>>, %arg3: memref<8x32xf32, #tpu.memory_space<vmem>>, %arg4: memref<32x32xf32, #tpu.memory_space<vmem>>, %arg5: memref<1x32xf32, #tpu.memory_space<vmem>>, %arg6: memref<32x32xf32, #tpu.memory_space<vmem>>, %arg7: memref<1x32xf32, #tpu.memory_space<vmem>>, %arg8: memref<32x10xf32, #tpu.memory_space<vmem>>, %arg9: memref<1x10xf32, #tpu.memory_space<vmem>>, %arg10: memref<8x10xf32, #tpu.memory_space<vmem>>, %arg11: memref<32x128xf32, #tpu.memory_space<vmem>>) attributes {dimension_semantics = [#tpu.dimension_semantics<parallel>, #tpu.dimension_semantics<arbitrary>], iteration_bounds = array<i64: 2, 1>, scalar_prefetch = 0 : i64, scratch_operands = 1 : i64, tpu.core_type = #tpu.core_type<tc>, window_params = [{transform_indices = @transform_0, window_bounds = array<i64: 32, 256>}, {pipeline_mode = #tpu.pipeline_mode<synchronous>, transform_indices = @transform_1, window_bounds = array<i64: 8, 32>}, {pipeline_mode = #tpu.pipeline_mode<synchronous>, transform_indices = @transform_2, window_bounds = array<i64: 32, 32>}, {pipeline_mode = #tpu.pipeline_mode<synchronous>, transform_indices = @transform_3, window_bounds = array<i64: 1, 32>}, {pipeline_mode = #tpu.pipeline_mode<synchronous>, transform_indices = @transform_4, window_bounds = array<i64: 32, 32>}, {pipeline_mode = #tpu.pipeline_mode<synchronous>, transform_indices = @transform_5, window_bounds = array<i64: 1, 32>}, {pipeline_mode = #tpu.pipeline_mode<synchronous>, transform_indices = @transform_6, window_bounds = array<i64: 32, 10>}, {pipeline_mode = #tpu.pipeline_mode<synchronous>, transform_indices = @transform_7, window_bounds = array<i64: 1, 10>}, {transform_indices = @transform_8, window_bounds = array<i64: 8, 10>}]} {
    %c0 = arith.constant 0 : index
    %c0_0 = arith.constant 0 : index
    %0 = vector.load %arg2[%c0, %c0_0] : memref<32x256xf32, #tpu.memory_space<vmem>>, vector<32x256xf32>
    %1 = vector.extract_strided_slice %0 {offsets = [0, 0], sizes = [32, 128], strides = [1, 1]} : vector<32x256xf32> to vector<32x128xf32>
    %2 = vector.extract_strided_slice %0 {offsets = [0, 128], sizes = [32, 128], strides = [1, 1]} : vector<32x256xf32> to vector<32x128xf32>
    %3 = arith.addf %1, %2 : vector<32x128xf32>
    %c0_i32 = arith.constant 0 : i32
    %4 = arith.cmpi eq, %arg1, %c0_i32 : i32
    %5 = arith.extui %4 : i1 to i32
    %c0_i32_1 = arith.constant 0 : i32
    %6 = arith.cmpi ne, %5, %c0_i32_1 : i32
    scf.if %6 {
      %cst = arith.constant 0.000000e+00 : f32
      %13 = vector.broadcast %cst : f32 to vector<32x128xf32>
      %c0_8 = arith.constant 0 : index
      %c0_9 = arith.constant 0 : index
      %14 = vector.load %arg11[%c0_8, %c0_9] : memref<32x128xf32, #tpu.memory_space<vmem>>, vector<32x128xf32>
      tpu.vector_store %arg11[%c0_8, %c0_9], %13 {strides = array<i32>} : memref<32x128xf32, #tpu.memory_space<vmem>>, vector<32x128xf32>,
    } else {
    }
    %c0_2 = arith.constant 0 : index
    %c0_3 = arith.constant 0 : index
    %7 = vector.load %arg11[%c0_2, %c0_3] : memref<32x128xf32, #tpu.memory_space<vmem>>, vector<32x128xf32>
    %8 = arith.addf %7, %3 : vector<32x128xf32>
    %c0_4 = arith.constant 0 : index
    %c0_5 = arith.constant 0 : index
    %9 = vector.load %arg11[%c0_4, %c0_5] : memref<32x128xf32, #tpu.memory_space<vmem>>, vector<32x128xf32>
    tpu.vector_store %arg11[%c0_4, %c0_5], %8 {strides = array<i32>} : memref<32x128xf32, #tpu.memory_space<vmem>>, vector<32x128xf32>,
    %c0_i32_6 = arith.constant 0 : i32
    %10 = arith.cmpi eq, %arg1, %c0_i32_6 : i32
    %11 = arith.extui %10 : i1 to i32
    %c0_i32_7 = arith.constant 0 : i32
    %12 = arith.cmpi ne, %11, %c0_i32_7 : i32
    scf.if %12 {
      %c0_8 = arith.constant 0 : index
      %c0_9 = arith.constant 0 : index
      %13 = vector.load %arg11[%c0_8, %c0_9] : memref<32x128xf32, #tpu.memory_space<vmem>>, vector<32x128xf32>
      %cst = arith.constant dense<0.000000e+00> : vector<32xf32>
      %14 = vector.multi_reduction <add>, %13, %cst [1] : vector<32x128xf32> to vector<32xf32>
      %15 = vector.shape_cast %14 : vector<32xf32> to vector<32x1xf32>
      %cst_10 = arith.constant 3.906250e-03 : f32
      %16 = vector.broadcast %cst_10 : f32 to vector<32x1xf32>
      %17 = arith.mulf %15, %16 : vector<32x1xf32>
      %c0_11 = arith.constant 0 : index
      %c0_12 = arith.constant 0 : index
      %18 = vector.load %arg3[%c0_11, %c0_12] : memref<8x32xf32, #tpu.memory_space<vmem>>, vector<8x32xf32>
      %c0_13 = arith.constant 0 : index
      %c0_14 = arith.constant 0 : index
      %19 = vector.load %arg4[%c0_13, %c0_14] : memref<32x32xf32, #tpu.memory_space<vmem>>, vector<32x32xf32>
      %20 = vector.broadcast %17 : vector<32x1xf32> to vector<32x32xf32>
      %21 = arith.mulf %20, %19 : vector<32x32xf32>
      %cst_15 = arith.constant dense<0.000000e+00> : vector<8x32xf32>
      %22 = tpu.matmul %18, %21, %cst_15 {dimension_numbers = #tpu.dot_dimension_numbers<[1], [0], [0], [1], [0, 0, 1, 1], [], []>, precision = #tpu.contract_precision<fp32>} : vector<8x32xf32>, vector<32x32xf32>, vector<8x32xf32> -> vector<8x32xf32>
      %c0_16 = arith.constant 0 : index
      %c0_17 = arith.constant 0 : index
      %23 = vector.load %arg5[%c0_16, %c0_17] : memref<1x32xf32, #tpu.memory_space<vmem>>, vector<1x32xf32>
      %24 = vector.broadcast %23 : vector<1x32xf32> to vector<8x32xf32>
      %25 = arith.addf %22, %24 : vector<8x32xf32>
      %cst_18 = arith.constant 0.000000e+00 : f32
      %26 = vector.broadcast %cst_18 : f32 to vector<8x32xf32>
      %27 = arith.maximumf %25, %26 : vector<8x32xf32>
      %c0_19 = arith.constant 0 : index
      %c0_20 = arith.constant 0 : index
      %28 = vector.load %arg6[%c0_19, %c0_20] : memref<32x32xf32, #tpu.memory_space<vmem>>, vector<32x32xf32>
      %cst_21 = arith.constant dense<0.000000e+00> : vector<8x32xf32>
      %29 = tpu.matmul %27, %28, %cst_21 {dimension_numbers = #tpu.dot_dimension_numbers<[1], [0], [0], [1], [0, 0, 1, 1], [], []>, precision = #tpu.contract_precision<fp32>} : vector<8x32xf32>, vector<32x32xf32>, vector<8x32xf32> -> vector<8x32xf32>
      %c0_22 = arith.constant 0 : index
      %c0_23 = arith.constant 0 : index
      %30 = vector.load %arg7[%c0_22, %c0_23] : memref<1x32xf32, #tpu.memory_space<vmem>>, vector<1x32xf32>
      %31 = vector.broadcast %30 : vector<1x32xf32> to vector<8x32xf32>
      %32 = arith.addf %29, %31 : vector<8x32xf32>
      %cst_24 = arith.constant 0.000000e+00 : f32
      %33 = vector.broadcast %cst_24 : f32 to vector<8x32xf32>
      %34 = arith.maximumf %32, %33 : vector<8x32xf32>
      %c0_25 = arith.constant 0 : index
      %c0_26 = arith.constant 0 : index
      %35 = vector.load %arg8[%c0_25, %c0_26] : memref<32x10xf32, #tpu.memory_space<vmem>>, vector<32x10xf32>
      %cst_27 = arith.constant dense<0.000000e+00> : vector<8x10xf32>
      %36 = tpu.matmul %34, %35, %cst_27 {dimension_numbers = #tpu.dot_dimension_numbers<[1], [0], [0], [1], [0, 0, 1, 1], [], []>, precision = #tpu.contract_precision<fp32>} : vector<8x32xf32>, vector<32x10xf32>, vector<8x10xf32> -> vector<8x10xf32>
      %c0_28 = arith.constant 0 : index
      %c0_29 = arith.constant 0 : index
      %37 = vector.load %arg9[%c0_28, %c0_29] : memref<1x10xf32, #tpu.memory_space<vmem>>, vector<1x10xf32>
      %38 = vector.broadcast %37 : vector<1x10xf32> to vector<8x10xf32>
      %39 = arith.addf %36, %38 : vector<8x10xf32>
      %c0_30 = arith.constant 0 : index
      %c0_31 = arith.constant 0 : index
      %40 = vector.load %arg10[%c0_30, %c0_31] : memref<8x10xf32, #tpu.memory_space<vmem>>, vector<8x10xf32>
      tpu.vector_store %arg10[%c0_30, %c0_31], %39 {strides = array<i32>} : memref<8x10xf32, #tpu.memory_space<vmem>>, vector<8x10xf32>,
    } else {
    }
    return
  }
  func.func @transform_0(%arg0: i32, %arg1: i32) -> (i32, i32) {
    %c0_i32 = arith.constant 0 : i32
    return %arg0, %arg1 : i32, i32
  }
  func.func @transform_1(%arg0: i32, %arg1: i32) -> (i32, i32) {
    %c0_i32 = arith.constant 0 : i32
    %c0_i32_0 = arith.constant 0 : i32
    %c0_i32_1 = arith.constant 0 : i32
    return %c0_i32, %c0_i32_0 : i32, i32
  }
  func.func @transform_2(%arg0: i32, %arg1: i32) -> (i32, i32) {
    %c0_i32 = arith.constant 0 : i32
    %c0_i32_0 = arith.constant 0 : i32
    %c0_i32_1 = arith.constant 0 : i32
    return %c0_i32, %c0_i32_0 : i32, i32
  }
  func.func @transform_3(%arg0: i32, %arg1: i32) -> (i32, i32) {
    %c0_i32 = arith.constant 0 : i32
    %c0_i32_0 = arith.constant 0 : i32
    %c0_i32_1 = arith.constant 0 : i32
    return %c0_i32, %c0_i32_0 : i32, i32
  }
  func.func @transform_4(%arg0: i32, %arg1: i32) -> (i32, i32) {
    %c0_i32 = arith.constant 0 : i32
    %c0_i32_0 = arith.constant 0 : i32
    %c0_i32_1 = arith.constant 0 : i32
    return %c0_i32, %c0_i32_0 : i32, i32
  }
  func.func @transform_5(%arg0: i32, %arg1: i32) -> (i32, i32) {
    %c0_i32 = arith.constant 0 : i32
    %c0_i32_0 = arith.constant 0 : i32
    %c0_i32_1 = arith.constant 0 : i32
    return %c0_i32, %c0_i32_0 : i32, i32
  }
  func.func @transform_6(%arg0: i32, %arg1: i32) -> (i32, i32) {
    %c0_i32 = arith.constant 0 : i32
    %c0_i32_0 = arith.constant 0 : i32
    %c0_i32_1 = arith.constant 0 : i32
    return %c0_i32, %c0_i32_0 : i32, i32
  }
  func.func @transform_7(%arg0: i32, %arg1: i32) -> (i32, i32) {
    %c0_i32 = arith.constant 0 : i32
    %c0_i32_0 = arith.constant 0 : i32
    %c0_i32_1 = arith.constant 0 : i32
    return %c0_i32, %c0_i32_0 : i32, i32
  }
  func.func @transform_8(%arg0: i32, %arg1: i32) -> (i32, i32) {
    %c0_i32 = arith.constant 0 : i32
    %c0_i32_0 = arith.constant 0 : i32
    return %arg0, %c0_i32 : i32, i32
  }
}

</mosaic_0001>

<bundles_post_ra>
// kernel: tpu_custom_call.1
= control target key start
LH: loop header
LB: loop body
LE: loop exit
PB: predicated region body
PF: predicated region fallthrough
CT: control target
= control target key end

     0   :  { %s3078_s0 = inlined_call_operand.hbm [shape: f32[64,256], index: 0, kind: input, shape index: {}]   ;;  %s3079_s1 = inlined_call_operand.vmem [shape: f32[8,32], index: 1, kind: input, shape index: {}]   ;;  %s3080_s2 = inlined_call_operand.vmem [shape: f32[32,32], index: 2, kind: input, shape index: {}]   ;;  %s3081_s3 = inlined_call_operand.vmem [shape: f32[1,32], index: 3, kind: input, shape index: {}]   ;;  %s3082_s4 = inlined_call_operand.hbm [shape: f32[32,32], index: 4, kind: input, shape index: {}]   ;;  %s3083_s5 = inlined_call_operand.vmem [shape: f32[1,32], index: 5, kind: input, shape index: {}]   ;;  %s3084_s6 = inlined_call_operand.vmem [shape: f32[32,10], index: 6, kind: input, shape index: {}]   ;;  %s3085_s7 = inlined_call_operand.vmem [shape: f32[1,10], index: 7, kind: input, shape index: {}]   ;;  %s3086_s8 = inlined_call_operand.hbm [shape: f32[16,10], index: 8, kind: output, shape index: {}]  }
   0x1   :  { %3092 = sst [smem:[#allocation16_spill]] %s3082_s4 }
   0x2   :  { %13 = vsyncpa [#allocation4], 0 }
   0x3   :  { %15 = vsyncpa [#allocation4 + $0x1], 0 }
   0x4   :  { %16 = vsyncpa [#allocation7], 0 }
   0x5   :  { %17 = vsyncpa [#allocation5], 0 }
   0x6   :  { %19 = vsyncpa [#allocation5 + $0x1], 0  ;;  %s2604_s27 = smov 0   ;;  %s2606_s28 = smov 0  }
   0x7   :  { %s2608_s29 = smov 0   ;;  %s2610_s30 = smov 0  }
   0x8   :  { %s2612_s9 = smov 0   ;;  %s2614_s10 = smov 0  }
   0x9 LB: > { %3093 = sst [smem:[#allocation12_spill]] %s2528_s27  ;;  %s2021_s11 = sadd.s32 4294967295, %s2548_s10   ;;  %s2548_s10 = sphi %s2614_s10, %s25_s10   ;;  %s2544_s9 = sphi %s2612_s9, %s3113_s9   ;;  %s2540_s30 = sphi %s2610_s30, %s3112_s30   ;;  %s2536_s29 = sphi %s2608_s29, %s3116_s29   ;;  %s2532_s28 = sphi %s2606_s28, %s3115_s28   ;;  %s2528_s27 = sphi %s2604_s27, %s3114_s27  }
   0xa   : > { %3094 = sst [smem:[#allocation13_spill]] %s2544_s9  ;;  %s2022_s12 = sadd.s32 4294967294, %s2548_s10  }
   0xb   : > { %p59_p0 = scmp.ne.s32.totalorder %s2532_s28, %s2528_s27  ;;  %p2638_p1 = scmp.eq.s32.totalorder %s2021_s11, 0 }
   0xc   : > { %p2642_p2 = scmp.eq.s32.totalorder %s2021_s11, 1  ;;  %p236_p3 = scmp.eq.s32.totalorder %s2022_s12, 1 }
   0xd   : > { %p2648_p4 = por %p2638_p1, %p59_p0  ;;  %p2023_p5 = scmp.ge.s32.totalorder %s2548_s10, 1 }
   0xe   : > { %p2653_p6 = por %p236_p3, %p59_p0  ;;  %p243_p7 = scmp.lt.s32.totalorder %s2548_s10, 3 }
   0xf   : > { %s3097_s15 = scalar_select %p2648_p4, 1, 0 }
  0x10   : > { %s3098_s16 = scalar_select %p2653_p6, 1, 0 }
  0x11   : > { %p2658_p8 = pnand %p2023_p5, %p243_p7  ;;  %s2550_s18 = smov [#allocation6]  }
  0x12   : > { %3099 = sst [smem:[#allocation14_spill]] %s3098_s16  ;;  %s264_s19 = sshll.u32 %s2550_s18, 4  ;;  %s265_s19 = int_to_ptr.vmem [resolvable:$true] %s264_s19 }
  0x13   : > { %p2339_p9 = pneg %p2658_p8  ;;  %s37_s21 = sadd.s32 1, %s2544_s9 }
  0x14   : > { %s2421_s22 = scalar_lea.vmem %s265_s19, 512  ;;  %p2429_p5 = scmp.lt.s32.totalorder %s265_s19, %s265_s19 }
  0x15   : > { %p2667_p11 = pnand %p2339_p9, %p2638_p1  ;;  %p2422_p13 = scmp.ne.s32.totalorder %s265_s19, %s2421_s22 }
  0x16   : > { %p2430_p7 = scmp.lt.s32.totalorder %s2421_s22, %s2421_s22 }
  0x17   : > { %p2412_p12 = pneg %p2667_p11 }
  0x18   : > { %p2431_p6 = por %p2430_p7, %p2429_p5 }
  0x19   : > { %p2424_p0 = pnand %p2422_p13, %p2412_p12 }
  0x1b   : > { %p2425_p3 = pneg %p2424_p0 }
  0x1d   : > { %p2432_p4 = pnand %p2431_p6, %p2425_p3 }
  0x1f   : > { %2435 = shalt.err (!%p2432_p4)
}
  0x20   : > { %s2551_s23 = smov 128   ;;  %s2552_s24 = smov 8  }
  0x21   : > { %s3102_s4 = sld [smem:[#allocation16_spill]]  ;;  %p39_p6 = scmp.ge.s32.totalorder %s37_s21, 2 }
  0x22   : > { %s46_s11 = sadd.s32 1, %s2536_s29  ;;  %p53_p4 = scmp.ne.s32.totalorder %s2536_s29, %s2532_s28 }
  0x23   : > { %p54_p9 = scmp.eq.s32.totalorder %s2548_s10, 0  ;;  %s3118_s21 = smov (%p39_p6, %s37_s21), 0 }
  0x24   : > { %3103 = sst [smem:[#allocation15_spill]] %s3118_s21  ;;  %p2691_p13 = por %p2642_p2, %p53_p4 }
  0x25   : > { %p2685_p12 = por %p54_p9, %p53_p4  ;;  %s41_s20 = ssub.s32 %s2544_s9, %s3118_s21 }
  0x26   : > { %p2352_p0 = scmp.lt.s32.totalorder %s2548_s10, 2 }
  0x27   : > { %2342 = dma.hbm_to_vmem [thread:$0]  (!%p2667_p11), %s3102_s4, 512, %s265_s19, [#allocation7], %s2551_s23, %s2551_s23, %s2552_s24  }
  0x28   : > { %p44_p11 = scmp.eq.s32.totalorder %s41_s20, 0  ;;  %s287_s19 = sand.u32 1, %s2536_s29  }
  0x29   : > { %s2026_s22 = sshll.u32 %s287_s19, 6  ;;  %s2042_s24 = sshll.u32 %s2544_s9, 10 }
  0x2a   : > { %s2700_s23 = scalar_select %p44_p11, %s2536_s29, %s46_s11  }
  0x2b   : > { %s300_s4 = scalar_lea.hbm %s3078_s0, %s2042_s24  ;;  %s291_s16 = scalar_lea.vmem [#allocation3], %s2026_s22 }
  0x2c   : > { %s301_s27 = sshll.u32 %s291_s16, 4  ;;  %p2708_p2 = pnand %p2352_p0, %p2685_p12  ;;  %s302_s27 = int_to_ptr.vmem [resolvable:$true] %s301_s27 }
  0x2d   : > { %s288_s21 = scalar_lea.sflag [#allocation4], %s287_s19  ;;  %s2449_s20 = scalar_lea.vmem %s302_s27, 1024 }
  0x2e   : > { %p2438_p3 = pneg %p2708_p2  ;;  %p2450_p5 = scmp.ne.s32.totalorder %s302_s27, %s2449_s20 }
  0x2f   : > { %s2553_s11 = smov [#allocation3]  }
  0x30   : > { %p2452_p7 = pnand %p2450_p5, %p2438_p3  ;;  %s2454_s9 = sshll.u32 %s2553_s11, 4  ;;  %s2455_s9 = int_to_ptr.vmem [resolvable:$false] %s2454_s9 }
  0x31   : > { %s2456_s24 = scalar_lea.vmem %s2455_s9, 2048  ;;  %p2457_p4 = scmp.lt.s32.totalorder %s302_s27, %s2455_s9 }
  0x32   : > { %p2453_p6 = pneg %p2452_p7  ;;  %p2458_p9 = scmp.lt.s32.totalorder %s2456_s24, %s2449_s20 }
  0x34   : > { %p2459_p11 = por %p2458_p9, %p2457_p4 }
  0x36   : > { %p2460_p10 = pnand %p2459_p11, %p2453_p6 }
  0x38   : > { %2463 = shalt.err (!%p2460_p10)
}
  0x39   : > { %s2554_s16 = smov 256   ;;  %s2555_s12 = smov 16  }
  0x3a   : > { %2346 = dma.hbm_to_vmem [thread:$0]  (!%p2708_p2), %s300_s4, 1024, %s302_s27, %s288_s21, %s2554_s16, %s2554_s16, %s2555_s12  }
  0x3b   : > { %313 = sbr.rel (%p2658_p8) target bundleno = 913 (0x391), region = 52  ;;  %s2719_s19 = sand.u32 (!%p2658_p8), 1, %s2532_s28  }
  0x3c   : > { %s2031_s22 = sshll.u32 (!%p2658_p8), %s2719_s19, 6  ;;  %s316_s9 = scalar_lea.sflag (!%p2658_p8), [#allocation4], %s2719_s19 }
  0x3d   : > { %s319_s25 = scalar_lea.vmem (!%p2658_p8), [#allocation3], %s2031_s22  ;;  %p3107_p12 = scmp.ne.s32.totalorder (!%p2658_p8), %s3097_s15, 0 }
  0x40   : > { %2515 = dma.done.wait (%p3107_p12), %s316_s9, 1024  }
  0x41   : > { %2517 = vsyncadd (%p3107_p12), %s316_s9, 4294966272 }
  0x42   : > { %2519 = dma.done.wait (%p2638_p1), [#allocation7], 512  }
  0x43   : > { %2521 = vsyncadd (%p2638_p1), [#allocation7], 4294966784  ;;  %v364_v0 = vld [vmem:[%s319_s25 + $0x30] sm:$0xff]  ;;  %v365_v1 = vld [vmem:[%s319_s25 + $0x38] sm:$0xff]  ;;  %v2556_v12 = vmov 0.0   ;;  %vm2557_vm0 = vmmov 0  }
  0x44   : > { %v360_v2 = vld [vmem:[%s319_s25 + $0x10] sm:$0xff]  ;;  %v369_v3 = vadd.f32 %v365_v1, %v364_v0  ;;  %v361_v4 = vld [vmem:[%s319_s25 + $0x18] sm:$0xff]  ;;  %v362_v5 = vld [vmem:[%s319_s25 + $0x20] sm:$0xff]  ;;  %2133 = vmatprep.subr.mxu0 %v2556_v12  ;;  %2144 = vmatprep.subr.mxu1 %v2556_v12  ;;  %vm425_vm1 = vcmask 261120   ;;  %s2033_s20 = sshll.u32 %s2719_s19, 3  ;;  %s2038_s11 = sshll.u32 %s2540_s30, 7 }
  0x45   : > { %v363_v6 = vld [vmem:[%s319_s25 + $0x28] sm:$0xff]  ;;  %v367_v7 = vadd.f32 %v361_v4, %v360_v2  ;;  %v358_v8 = vld [vmem:[%s319_s25] sm:$0xff]  ;;  %2141 = vmatprep.mubr.msk.f32.mxu0 %vm2557_vm0, %v2556_v12  ;;  %2152 = vmatprep.mubr.msk.f32.mxu1 %vm2557_vm0, %v2556_v12  ;;  %v413_v16 = vld [vmem:[%s3080_s2 + $0x18] sm:$0xff]  ;;  %s355_s24 = scalar_lea.vmem [#allocation8], %s2033_s20  ;;  %vm1914_vm2 = vcmask 80896   ;;  %s1928_s9 = scalar_lea.hbm %s3086_s8, %s2038_s11 }
  0x46   : > { %v359_v9 = vld [vmem:[%s319_s25 + $0x8] sm:$0xff]  ;;  %403 = vadd.xlane.f32.xlu0 %v369_v3  ;;  %v368_v10 = vadd.f32 %v363_v6, %v362_v5  ;;  %v409_v13 = vld [vmem:[%s3079_s1] sm:$0xff]  ;;  %v412_v25 = vld [vmem:[%s3080_s2 + $0x10] sm:$0xff]  ;;  %s1930_s16 = sshll.u32 %s355_s24, 4  ;;  %s1917_s25 = scalar_lea.sflag [#allocation5], %s2719_s19  ;;  %s1931_s16 = int_to_ptr.vmem [resolvable:$true] %s1930_s16 }
  0x47   : > { %399 = vadd.xlane.f32.xlu1 %v367_v7  ;;  %v366_v11 = vadd.f32 %v359_v9, %v358_v8  ;;  %v427_v14 = vsel %vm425_vm1, %v409_v13, 0  ;;  %v411_v20 = vld [vmem:[%s3080_s2 + $0x8] sm:$0xff]  ;;  %v410_v30 = vld [vmem:[%s3080_s2] sm:$0xff]  ;;  %v918_v56 = vld [vmem:[#allocation6 + $0x18] sm:$0xff]  ;;  %s2464_s4 = scalar_lea.vmem %s1931_s16, 128  ;;  %s2558_s27 = smov [#allocation8]  }
  0x48   : > { %v2741_v15 = vand.u32 4294901760, %v427_v14  ;;  %v2828_v57 = vand.u32 4294901760, %v918_v56  ;;  %v917_v58 = vld [vmem:[#allocation6 + $0x10] sm:$0xff]  ;;  %v916_v61 = vld [vmem:[#allocation6 + $0x8] sm:$0xff]  ;;  %v915_v1 = vld [vmem:[#allocation6] sm:$0xff]  ;;  %p2465_p1 = scmp.ne.s32.totalorder %s1931_s16, %s2464_s4  ;;  %s2468_s30 = sshll.u32 %s2558_s27, 4  ;;  %s2469_s30 = int_to_ptr.vmem [resolvable:$false] %s2468_s30 }
  0x49   : > { %v2833_v60 = vand.u32 4294901760, %v917_v58  ;;  %v2841_v0 = vand.u32 4294901760, %v916_v61  ;;  %v2852_v5 = vand.u32 4294901760, %v915_v1  ;;  %s2470_s13 = scalar_lea.vmem %s2469_s30, 256  ;;  %p2471_p0 = scmp.lt.s32.totalorder %s1931_s16, %s2469_s30 }
  0x4a   : > { %401 = vadd.xlane.f32.xlu0 %v368_v10  ;;  %v2747_v18 = vsub.f32 %v427_v14, %v2741_v15  ;;  %v2831_v59 = vsub.f32 %v918_v56, %v2828_v57  ;;  %p2466_p8 = pnand %p2465_p1, %p2691_p13  ;;  %p2472_p2 = scmp.lt.s32.totalorder %s2470_s13, %s2464_s4 }
  0x4b   : > { %397 = vadd.xlane.f32.xlu1 %v366_v11  ;;  %v2839_v63 = vsub.f32 %v917_v58, %v2833_v60  ;;  %v2850_v4 = vsub.f32 %v916_v61, %v2841_v0  ;;  %v2861_v9 = vsub.f32 %v915_v1, %v2852_v5 }
  0x4c   : > { %v500_v27 = vand.u32 4294901760, %v2747_v18  ;;  %v1035_v62 = vand.u32 4294901760, %v2831_v59  ;;  %p2467_p10 = pneg %p2466_p8  ;;  %p2473_p3 = por %p2472_p2, %p2471_p0 }
  0x4d   : > { %v1042_v3 = vand.u32 4294901760, %v2839_v63  ;;  %v1049_v8 = vand.u32 4294901760, %v2850_v4  ;;  %v1056_v13 = vand.u32 4294901760, %v2861_v9 }
  0x4e   : > { %v501_v38 = vsub.f32 %v2747_v18, %v500_v27  ;;  %v1036_v2 = vsub.f32 %v2831_v59, %v1035_v62  ;;  %p2474_p5 = pnand %p2473_p3, %p2467_p10 }
  0x4f   : > { %v1043_v7 = vsub.f32 %v2839_v63, %v1042_v3  ;;  %v1050_v11 = vsub.f32 %v2850_v4, %v1049_v8 }
  0x50   : > { %v502_v46 = vand.u32 4294901760, %v501_v38  ;;  %v1037_v6 = vand.u32 4294901760, %v1036_v2 }
  0x51   : > { %v1044_v10 = vand.u32 4294901760, %v1043_v7  ;;  %v1051_v14 = vand.u32 4294901760, %v1050_v11 }
  0xcf   : > { %v404_v17 = vpop.xlane.xlu0 %403 }
  0xd0   : > { %v408_v19 = vmul.f32 0.00390625, %v404_v17  ;;  %v400_v21 = vpop.xlane.xlu1 %399 }
  0xd1   : > { %v406_v22 = vmul.f32 0.00390625, %v400_v21 }
  0xd2   : > { %v417_v23 = vmul.f32 %v413_v16, %v408_v19  ;;  %v2034_v19 = vld [vmem:[%s3081_s3] ss:$0 sm:$0xff] }
  0xd3   : > { %v415_v24 = vmul.f32 %v411_v20, %v406_v22  ;;  %v402_v26 = vpop.xlane.xlu0 %401 }
  0xd4   : > { %v2756_v28 = vand.u32 4294901760, %v417_v23  ;;  %v407_v29 = vmul.f32 0.00390625, %v402_v26  ;;  %v398_v31 = vpop.xlane.xlu1 %397 }
  0xd5   : > { %v2761_v32 = vand.u32 4294901760, %v415_v24  ;;  %v405_v33 = vmul.f32 0.00390625, %v398_v31 }
  0xd6   : > { %v534_v34 = vsub.f32 %v417_v23, %v2756_v28  ;;  %v416_v35 = vmul.f32 %v412_v25, %v407_v29  ;;  %2134 = vmatpush3.msra.mxu0 %v2756_v28 }
  0xd7   : > { %v548_v36 = vsub.f32 %v415_v24, %v2761_v32  ;;  %v414_v37 = vmul.f32 %v410_v30, %v405_v33  ;;  %2135 = vmatprep.subr.mxu0 %v2556_v12 }
  0xd8   : > { %v2770_v39 = vand.u32 4294901760, %v416_v35  ;;  %v535_v40 = vand.u32 4294901760, %v534_v34 }
  0xd9   : > { %v2772_v41 = vand.u32 4294901760, %v414_v37  ;;  %v549_v44 = vand.u32 4294901760, %v548_v36 }
  0xda   : > { %v541_v42 = vsub.f32 %v416_v35, %v2770_v39  ;;  %2136 = vmatpush3.msra.mxu0 %v2770_v39  ;;  %v536_v43 = vsub.f32 %v534_v34, %v535_v40 }
  0xdb   : > { %v555_v45 = vsub.f32 %v414_v37, %v2772_v41  ;;  %2137 = vmatprep.subr.mxu0 %v2556_v12  ;;  %v550_v51 = vsub.f32 %v548_v36, %v549_v44 }
  0xdc   : > { %2138 = vmatpush3.msra.mxu0 %v2761_v32  ;;  %v537_v47 = vand.u32 4294901760, %v536_v43  ;;  %v542_v48 = vand.u32 4294901760, %v541_v42  ;;  %v1418_v43 = vld [vmem:[%s3084_s6 + $0x18] sm:$0xff] }
  0xdd   : > { %2139 = vmatprep.subr.mxu0 %v2556_v12  ;;  %v556_v49 = vand.u32 4294901760, %v555_v45  ;;  %v551_v54 = vand.u32 4294901760, %v550_v51 }
  0xde   : > { %2140 = vmatpush3.msra.mxu0 %v2772_v41  ;;  %2145 = vmatpush3.msra.mxu1 %v537_v47  ;;  %v543_v50 = vsub.f32 %v541_v42, %v542_v48 }
  0xdf   : > { %2155 = vmatprep.subr.mxu0 %v2556_v12  ;;  %2142 = vmatmul.mubr.f32.vlgmr.msra.gmra.mxu0 %v502_v46  ;;  %v557_v53 = vsub.f32 %v555_v45, %v556_v49 }
  0xe0   : > { %2156 = vmatpush3.msra.mxu0 %v534_v34  ;;  %2146 = vmatprep.subr.mxu1 %v2556_v12  ;;  %v544_v52 = vand.u32 4294901760, %v543_v50 }
  0xe1   : > { %2157 = vmatprep.subr.mxu0 %v2556_v12  ;;  %2163 = vmatprep.mubr.msk.f32.mxu0 %vm2557_vm0, %v2556_v12  ;;  %v558_v55 = vand.u32 4294901760, %v557_v53 }
  0xe2   : > { %2147 = vmatpush3.msra.mxu1 %v544_v52  ;;  %2158 = vmatpush3.msra.mxu0 %v541_v42  ;;  %v1415_v52 = vld [vmem:[%s3084_s6] sm:$0xff] }
  0xe3   : > { %2148 = vmatprep.subr.mxu1 %v2556_v12  ;;  %2159 = vmatprep.subr.mxu0 %v2556_v12  ;;  %v2964_v56 = vand.u32 4294901760, %v1415_v52 }
  0xe4   : > { %2149 = vmatpush3.msra.mxu1 %v551_v54  ;;  %2160 = vmatpush3.msra.mxu0 %v548_v36 }
  0xe5   : > { %2150 = vmatprep.subr.mxu1 %v2556_v12  ;;  %2161 = vmatprep.subr.mxu0 %v2556_v12 }
  0xe6   : > { %2151 = vmatpush3.msra.mxu1 %v558_v55  ;;  %2162 = vmatpush3.msra.mxu0 %v555_v45  ;;  %v1417_v45 = vld [vmem:[%s3084_s6 + $0x10] sm:$0xff] }
  0xe7   : > { %2153 = vmatmul.mubr.f32.vlgmr.msra.gmra.mxu1 %v2741_v15  ;;  %2166 = vmatprep.subr.mxu1 %v2556_v12  ;;  %v2939_v47 = vand.u32 4294901760, %v1417_v45 }
  0xe8   : > { %2177 = vmatprep.subr.mxu0 %v2556_v12  ;;  %2164 = vmatmul.mubr.f32.vlgmr.msra.gmra.mxu0 %v2747_v18 }
  0xe9   : > { %2167 = vmatpush3.msra.mxu1 %v2756_v28  ;;  %2178 = vmatpush3.msra.mxu0 %v535_v40  ;;  %v2948_v50 = vsub.f32 %v1417_v45, %v2939_v47 }
  0xea   : > { %2168 = vmatprep.subr.mxu1 %v2556_v12  ;;  %2179 = vmatprep.subr.mxu0 %v2556_v12 }
  0xeb   : > { %2169 = vmatpush3.msra.mxu1 %v2770_v39  ;;  %2180 = vmatpush3.msra.mxu0 %v542_v48  ;;  %v1416_v48 = vld [vmem:[%s3084_s6 + $0x8] sm:$0xff]  ;;  %v1542_v54 = vand.u32 4294901760, %v2948_v50 }
  0xec   : > { %2170 = vmatprep.subr.mxu1 %v2556_v12  ;;  %2181 = vmatprep.subr.mxu0 %v2556_v12  ;;  %v2950_v51 = vand.u32 4294901760, %v1416_v48 }
  0xed   : > { %2171 = vmatpush3.msra.mxu1 %v2761_v32  ;;  %2182 = vmatpush3.msra.mxu0 %v549_v44  ;;  %v2931_v44 = vand.u32 4294901760, %v1418_v43  ;;  %v1543_v58 = vsub.f32 %v2948_v50, %v1542_v54 }
  0xee   : > { %2172 = vmatprep.subr.mxu1 %v2556_v12  ;;  %2183 = vmatprep.subr.mxu0 %v2556_v12  ;;  %v2962_v55 = vsub.f32 %v1416_v48, %v2950_v51 }
  0xef   : > { %2173 = vmatpush3.msra.mxu1 %v2772_v41  ;;  %2174 = vmatprep.mubr.msk.f32.mxu1 %vm2557_vm0, %v2556_v12  ;;  %v2937_v46 = vsub.f32 %v1418_v43, %v2931_v44  ;;  %v1544_v61 = vand.u32 4294901760, %v1543_v58 }
  0xf0   : > { %2184 = vmatpush3.msra.mxu0 %v556_v49  ;;  %2175 = vmatmul.mubr.f32.vlgmr.msra.gmra.mxu1 %v500_v27 }
  0xf1   : > { %2188 = vmatprep.subr.mxu1 %v2556_v12  ;;  %2185 = vmatprep.mubr.msk.f32.mxu0 %vm2557_vm0, %v2556_v12  ;;  %v1535_v49 = vand.u32 4294901760, %v2937_v46 }
  0xf2   : > { %2189 = vmatpush3.msra.mxu1 %v2756_v28  ;;  %2186 = vmatmul.mubr.f32.vlgmr.msra.gmra.mxu0 %v2741_v15 }
  0xf3   : > { %2190 = vmatprep.subr.mxu1 %v2556_v12  ;;  %2196 = vmatprep.mubr.msk.f32.mxu1 %vm2557_vm0, %v2556_v12  ;;  %v1536_v53 = vsub.f32 %v2937_v46, %v1535_v49 }
  0xf4   : > { %2191 = vmatpush3.msra.mxu1 %v2770_v39  ;;  %2199 = vmatprep.subr.mxu0 %v2556_v12 }
  0xf5   : > { %2192 = vmatprep.subr.mxu1 %v2556_v12  ;;  %2207 = vmatprep.mubr.msk.f32.mxu0 %vm2557_vm0, %v2556_v12 }
  0xf6   : > { %2193 = vmatpush3.msra.mxu1 %v2761_v32  ;;  %2200 = vmatpush3.msra.mxu0 %v2828_v57 }
  0xf7   : > { %2194 = vmatprep.subr.mxu1 %v2556_v12  ;;  %2201 = vmatprep.subr.mxu0 %v2556_v12 }
  0xf8   : > { %2195 = vmatpush3.msra.mxu1 %v2772_v41  ;;  %2202 = vmatpush3.msra.mxu0 %v2833_v60 }
  0xf9   : > { %2197 = vmatmul.mubr.f32.vlgmr.msra.gmra.mxu1 %v2741_v15  ;;  %2210 = vmatprep.subr.mxu1 %v2556_v12  ;;  %v1057_v15 = vsub.f32 %v2861_v9, %v1056_v13 }
  0xfa   : > { %2218 = vmatprep.mubr.msk.f32.mxu1 %vm2557_vm0, %v2556_v12  ;;  %2203 = vmatprep.subr.mxu0 %v2556_v12 }
  0xfb   : > { %2204 = vmatpush3.msra.mxu0 %v2841_v0  ;;  %2211 = vmatpush3.msra.mxu1 %v1037_v6  ;;  %v1058_v16 = vand.u32 4294901760, %v1057_v15 }
  0xfc   : > { %2205 = vmatprep.subr.mxu0 %v2556_v12  ;;  %2212 = vmatprep.subr.mxu1 %v2556_v12 }
  0xfd   : > { %2206 = vmatpush3.msra.mxu0 %v2852_v5  ;;  %2213 = vmatpush3.msra.mxu1 %v1044_v10 }
  0xfe   : > { %2221 = vmatprep.subr.mxu0 %v2556_v12  ;;  %2214 = vmatprep.subr.mxu1 %v2556_v12 }
  0xff   : > { %2215 = vmatpush3.msra.mxu1 %v1051_v14 }
 0x100   : > { %2216 = vmatprep.subr.mxu1 %v2556_v12 }
 0x101   : > { %2217 = vmatpush3.msra.mxu1 %v1058_v16 }
 0x102   : > { %2232 = vmatprep.subr.mxu1 %v2556_v12 }
 0x19f   : > { %v504_v17 = vpop.f32.mrf.mxu0 }
 0x1a0   : > { %v505_v23 = vadd.f32 %v2034_v19, %v504_v17 }
 0x1a1   : > { %v2143_v18 = vpop.f32.mrf.mxu0 }
 0x1a7   : > { %v595_v20 = vpop.f32.mrf.mxu1 }
 0x1a8   : > { %v675_v21 = vpop.f32.mrf.mxu0  ;;  %v596_v25 = vadd.f32 %v595_v20, %v505_v23 }
 0x1a9   : > { %v2154_v22 = vpop.f32.mrf.mxu1 }
 0x1aa   : > { %v2165_v24 = vpop.f32.mrf.mxu0  ;;  %v676_v27 = vadd.f32 %v675_v21, %v596_v25 }
 0x1b0   : > { %v752_v26 = vpop.f32.mrf.mxu1 }
 0x1b1   : > { %v753_v30 = vadd.f32 %v752_v26, %v676_v27 }
 0x1b2   : > { %v2176_v28 = vpop.f32.mrf.mxu1  ;;  %v835_v29 = vpop.f32.mrf.mxu0 }
 0x1b3   : > { %v836_v32 = vadd.f32 %v835_v29, %v753_v30 }
 0x1b4   : > { %v2187_v31 = vpop.f32.mrf.mxu0 }
 0x1b9   : > { %v910_v33 = vpop.f32.mrf.mxu1 }
 0x1ba   : > { %v911_v34 = vadd.f32 %v910_v33, %v836_v32 }
 0x1bb   : > { %v2198_v35 = vpop.f32.mrf.mxu1 }
 0x1bc   : > { %v914_v36 = vmax.f32 %v911_v34, 0.0 }
 0x1be   : > { %v927_v37 = vsel %vm425_vm1, %v914_v36, 0  ;;  %v2036_v36 = vld [vmem:[%s3085_s7] ss:$0 sm:$0xff] }
 0x1bf   : > { %v998_v38 = vand.u32 4294901760, %v927_v37 }
 0x1c1   : > { %v999_v39 = vsub.f32 %v927_v37, %v998_v38  ;;  %2219 = vmatmul.mubr.f32.vlgmr.msra.gmra.mxu1 %v998_v38 }
 0x1c2   : > { %2233 = vmatpush3.msra.mxu1 %v2828_v57  ;;  %2240 = vmatprep.mubr.msk.f32.mxu1 %vm2557_vm0, %v2556_v12 }
 0x1c3   : > { %2234 = vmatprep.subr.mxu1 %v2556_v12  ;;  %v1000_v40 = vand.u32 4294901760, %v999_v39 }
 0x1c4   : > { %2235 = vmatpush3.msra.mxu1 %v2833_v60 }
 0x1c5   : > { %2236 = vmatprep.subr.mxu1 %v2556_v12  ;;  %v1001_v41 = vsub.f32 %v999_v39, %v1000_v40 }
 0x1c6   : > { %2237 = vmatpush3.msra.mxu1 %v2841_v0 }
 0x1c7   : > { %2238 = vmatprep.subr.mxu1 %v2556_v12  ;;  %v1002_v42 = vand.u32 4294901760, %v1001_v41 }
 0x1c8   : > { %2239 = vmatpush3.msra.mxu1 %v2852_v5 }
 0x1c9   : > { %2241 = vmatmul.mubr.f32.vlgmr.msra.gmra.mxu1 %v1000_v40  ;;  %2254 = vmatprep.subr.mxu1 %v2556_v12 }
 0x1ca   : > { %2208 = vmatmul.mubr.f32.vlgmr.msra.gmra.mxu0 %v1002_v42  ;;  %2255 = vmatpush3.msra.mxu1 %v2828_v57  ;;  %v1537_v57 = vand.u32 4294901760, %v1536_v53 }
 0x1cb   : > { %2222 = vmatpush3.msra.mxu0 %v2831_v59  ;;  %2256 = vmatprep.subr.mxu1 %v2556_v12  ;;  %v1549_v59 = vand.u32 4294901760, %v2962_v55 }
 0x1cc   : > { %2223 = vmatprep.subr.mxu0 %v2556_v12  ;;  %2257 = vmatpush3.msra.mxu1 %v2833_v60  ;;  %v2973_v60 = vsub.f32 %v1415_v52, %v2964_v56 }
 0x1cd   : > { %2224 = vmatpush3.msra.mxu0 %v2839_v63  ;;  %2258 = vmatprep.subr.mxu1 %v2556_v12 }
 0x1ce   : > { %2225 = vmatprep.subr.mxu0 %v2556_v12  ;;  %2259 = vmatpush3.msra.mxu1 %v2841_v0  ;;  %v1556_v63 = vand.u32 4294901760, %v2973_v60 }
 0x1cf   : > { %2226 = vmatpush3.msra.mxu0 %v2850_v4  ;;  %2260 = vmatprep.subr.mxu1 %v2556_v12 }
 0x1d0   : > { %2227 = vmatprep.subr.mxu0 %v2556_v12  ;;  %2229 = vmatprep.mubr.msk.f32.mxu0 %vm2557_vm0, %v2556_v12  ;;  %v1557_v1 = vsub.f32 %v2973_v60, %v1556_v63 }
 0x1d1   : > { %2228 = vmatpush3.msra.mxu0 %v2861_v9  ;;  %2261 = vmatpush3.msra.mxu1 %v2852_v5  ;;  %v2035_v9 = vld [vmem:[%s3083_s5] ss:$0 sm:$0xff] }
 0x1d2   : > { %2262 = vmatprep.mubr.msk.f32.mxu1 %vm2557_vm0, %v2556_v12  ;;  %2230 = vmatmul.mubr.f32.vlgmr.msra.gmra.mxu0 %v999_v39  ;;  %v1558_v2 = vand.u32 4294901760, %v1557_v1 }
 0x1d3   : > { %2243 = vmatprep.subr.mxu0 %v2556_v12  ;;  %2263 = vmatmul.mubr.f32.vlgmr.msra.gmra.mxu1 %v998_v38 }
 0x1d4   : > { %2244 = vmatpush3.msra.mxu0 %v1035_v62  ;;  %2251 = vmatprep.mubr.msk.f32.mxu0 %vm2557_vm0, %v2556_v12  ;;  %v1550_v62 = vsub.f32 %v2962_v55, %v1549_v59 }
 0x1d5   : > { %2245 = vmatprep.subr.mxu0 %v2556_v12  ;;  %2276 = vmatprep.subr.mxu1 %v2556_v12 }
 0x1d6   : > { %2246 = vmatpush3.msra.mxu0 %v1042_v3  ;;  %2284 = vmatprep.mubr.msk.f32.mxu1 %vm2557_vm0, %v2556_v12  ;;  %v1551_v0 = vand.u32 4294901760, %v1550_v62 }
 0x1d7   : > { %2247 = vmatprep.subr.mxu0 %v2556_v12  ;;  %2277 = vmatpush3.msra.mxu1 %v1537_v57 }
 0x1d8   : > { %2248 = vmatpush3.msra.mxu0 %v1049_v8  ;;  %2278 = vmatprep.subr.mxu1 %v2556_v12 }
 0x1d9   : > { %2249 = vmatprep.subr.mxu0 %v2556_v12  ;;  %2279 = vmatpush3.msra.mxu1 %v1544_v61 }
 0x1da   : > { %2250 = vmatpush3.msra.mxu0 %v1056_v13  ;;  %2280 = vmatprep.subr.mxu1 %v2556_v12 }
 0x1db   : > { %2252 = vmatmul.mubr.f32.vlgmr.msra.gmra.mxu0 %v998_v38  ;;  %2265 = vmatprep.subr.mxu0 %v2556_v12 }
 0x1dc   : > { %2273 = vmatprep.mubr.msk.f32.mxu0 %vm2557_vm0, %v2556_v12  ;;  %2266 = vmatpush3.msra.mxu0 %v2931_v44 }
 0x1dd   : > { %2267 = vmatprep.subr.mxu0 %v2556_v12  ;;  %2281 = vmatpush3.msra.mxu1 %v1551_v0 }
 0x1de   : > { %2268 = vmatpush3.msra.mxu0 %v2939_v47  ;;  %2282 = vmatprep.subr.mxu1 %v2556_v12 }
 0x1df   : > { %2269 = vmatprep.subr.mxu0 %v2556_v12  ;;  %2283 = vmatpush3.msra.mxu1 %v1558_v2 }
 0x1e0   : > { %2270 = vmatpush3.msra.mxu0 %v2950_v51  ;;  %2298 = vmatprep.subr.mxu1 %v2556_v12 }
 0x1e1   : > { %2271 = vmatprep.subr.mxu0 %v2556_v12 }
 0x1e2   : > { %2272 = vmatpush3.msra.mxu0 %v2964_v56 }
 0x1e3   : > { %2287 = vmatprep.subr.mxu0 %v2556_v12 }
 0x281   : > { %v1095_v3 = vpop.f32.mrf.mxu1 }
 0x283   : > { %v2220_v4 = vpop.f32.mrf.mxu1 }
 0x289   : > { %v1252_v5 = vpop.f32.mrf.mxu1 }
 0x28a   : > { %v1004_v6 = vpop.f32.mrf.mxu0 }
 0x28b   : > { %v2242_v7 = vpop.f32.mrf.mxu1  ;;  %v1005_v10 = vadd.f32 %v2035_v9, %v1004_v6 }
 0x28c   : > { %v2209_v8 = vpop.f32.mrf.mxu0 }
 0x28d   : > { %v1096_v14 = vadd.f32 %v1095_v3, %v1005_v10 }
 0x292   : > { %v1175_v11 = vpop.f32.mrf.mxu0 }
 0x293   : > { %v1410_v13 = vpop.f32.mrf.mxu1  ;;  %v1176_v17 = vadd.f32 %v1175_v11, %v1096_v14 }
 0x294   : > { %v2231_v15 = vpop.f32.mrf.mxu0 }
 0x295   : > { %v2264_v16 = vpop.f32.mrf.mxu1  ;;  %v1253_v18 = vadd.f32 %v1252_v5, %v1176_v17 }
 0x29b   : > { %v1335_v19 = vpop.f32.mrf.mxu0 }
 0x29c   : > { %v1336_v20 = vadd.f32 %v1335_v19, %v1253_v18 }
 0x29d   : > { %v2253_v21 = vpop.f32.mrf.mxu0 }
 0x29e   : > { %v1411_v22 = vadd.f32 %v1410_v13, %v1336_v20 }
 0x2a0   : > { %v1414_v23 = vmax.f32 %v1411_v22, 0.0 }
 0x2a2   : > { %v1427_v24 = vsel %vm425_vm1, %v1414_v23, 0 }
 0x2a3   : > { %v1498_v25 = vand.u32 4294901760, %v1427_v24 }
 0x2a5   : > { %v1499_v26 = vsub.f32 %v1427_v24, %v1498_v25  ;;  %2285 = vmatmul.mubr.f32.vlgmr.msra.gmra.mxu1 %v1498_v25 }
 0x2a6   : > { %2299 = vmatpush3.msra.mxu1 %v2931_v44  ;;  %2306 = vmatprep.mubr.msk.f32.mxu1 %vm2557_vm0, %v2556_v12 }
 0x2a7   : > { %2300 = vmatprep.subr.mxu1 %v2556_v12  ;;  %v1500_v27 = vand.u32 4294901760, %v1499_v26 }
 0x2a8   : > { %2301 = vmatpush3.msra.mxu1 %v2939_v47 }
 0x2a9   : > { %2302 = vmatprep.subr.mxu1 %v2556_v12  ;;  %v1501_v28 = vsub.f32 %v1499_v26, %v1500_v27 }
 0x2aa   : > { %2303 = vmatpush3.msra.mxu1 %v2950_v51 }
 0x2ab   : > { %2304 = vmatprep.subr.mxu1 %v2556_v12  ;;  %v1502_v29 = vand.u32 4294901760, %v1501_v28 }
 0x2ac   : > { %2305 = vmatpush3.msra.mxu1 %v2964_v56 }
 0x2ad   : > { %2307 = vmatmul.mubr.f32.vlgmr.msra.gmra.mxu1 %v1500_v27  ;;  %2320 = vmatprep.subr.mxu1 %v2556_v12 }
 0x2ae   : > { %2274 = vmatmul.mubr.f32.vlgmr.msra.gmra.mxu0 %v1502_v29  ;;  %2321 = vmatpush3.msra.mxu1 %v2931_v44 }
 0x2af   : > { %2288 = vmatpush3.msra.mxu0 %v2937_v46  ;;  %2322 = vmatprep.subr.mxu1 %v2556_v12 }
 0x2b0   : > { %2289 = vmatprep.subr.mxu0 %v2556_v12  ;;  %2323 = vmatpush3.msra.mxu1 %v2939_v47 }
 0x2b1   : > { %2290 = vmatpush3.msra.mxu0 %v2948_v50  ;;  %2324 = vmatprep.subr.mxu1 %v2556_v12 }
 0x2b2   : > { %2291 = vmatprep.subr.mxu0 %v2556_v12  ;;  %2325 = vmatpush3.msra.mxu1 %v2950_v51 }
 0x2b3   : > { %2292 = vmatpush3.msra.mxu0 %v2962_v55  ;;  %2326 = vmatprep.subr.mxu1 %v2556_v12 }
 0x2b4   : > { %2293 = vmatprep.subr.mxu0 %v2556_v12  ;;  %2295 = vmatprep.mubr.msk.f32.mxu0 %vm2557_vm0, %v2556_v12 }
 0x2b5   : > { %2294 = vmatpush3.msra.mxu0 %v2973_v60  ;;  %2327 = vmatpush3.msra.mxu1 %v2964_v56 }
 0x2b6   : > { %2328 = vmatprep.mubr.msk.f32.mxu1 %vm2557_vm0, %v2556_v12  ;;  %2296 = vmatmul.mubr.f32.vlgmr.msra.gmra.mxu0 %v1499_v26 }
 0x2b7   : > { %2309 = vmatprep.subr.mxu0 %v2556_v12  ;;  %2329 = vmatmul.mubr.f32.vlgmr.msra.gmra.mxu1 %v1498_v25 }
 0x2b8   : > { %2310 = vmatpush3.msra.mxu0 %v1535_v49  ;;  %2317 = vmatprep.mubr.msk.f32.mxu0 %vm2557_vm0, %v2556_v12 }
 0x2b9   : > { %2311 = vmatprep.subr.mxu0 %v2556_v12 }
 0x2ba   : > { %2312 = vmatpush3.msra.mxu0 %v1542_v54 }
 0x2bb   : > { %2313 = vmatprep.subr.mxu0 %v2556_v12 }
 0x2bc   : > { %2314 = vmatpush3.msra.mxu0 %v1549_v59 }
 0x2bd   : > { %2315 = vmatprep.subr.mxu0 %v2556_v12 }
 0x2be   : > { %2316 = vmatpush3.msra.mxu0 %v1556_v63 }
 0x2bf   : > { %2318 = vmatmul.mubr.f32.vlgmr.msra.gmra.mxu0 %v1498_v25 }
 0x365   : > { %v1595_v30 = vpop.f32.mrf.mxu1 }
 0x367   : > { %v2286_v31 = vpop.f32.mrf.mxu1 }
 0x36d   : > { %v1752_v32 = vpop.f32.mrf.mxu1 }
 0x36e   : > { %v1504_v33 = vpop.f32.mrf.mxu0 }
 0x36f   : > { %v2308_v34 = vpop.f32.mrf.mxu1  ;;  %v1505_v37 = vadd.f32 %v2036_v36, %v1504_v33 }
 0x370   : > { %v2275_v35 = vpop.f32.mrf.mxu0 }
 0x371   : > { %v1596_v12 = vadd.f32 %v1595_v30, %v1505_v37 }
 0x376   : > { %v1675_v38 = vpop.f32.mrf.mxu0 }
 0x377   : > { %v1910_v39 = vpop.f32.mrf.mxu1  ;;  %v1676_v42 = vadd.f32 %v1675_v38, %v1596_v12 }
 0x378   : > { %v2297_v40 = vpop.f32.mrf.mxu0 }
 0x379   : > { %v2330_v41 = vpop.f32.mrf.mxu1  ;;  %v1753_v43 = vadd.f32 %v1752_v32, %v1676_v42 }
 0x37f   : > { %v1835_v44 = vpop.f32.mrf.mxu0 }
 0x380   : > { %v1836_v45 = vadd.f32 %v1835_v44, %v1753_v43 }
 0x381   : > { %v2319_v46 = vpop.f32.mrf.mxu0 }
 0x382   : > { %v1911_v47 = vadd.f32 %v1910_v39, %v1836_v45 }
 0x384   : > { %1915 = vst.msk [vmem:[%s355_s24] sm:$0xff] %vm1914_vm2, %v1911_v47 }
 0x385   : > { %2477 = shalt.err (!%p2474_p5)
}
 0x386   : > { %s2478_s15 = scalar_lea.hbm %s1928_s9, 128  ;;  %s2482_s21 = scalar_lea.hbm %s3086_s8, 256 }
 0x387   : > { %p2479_p7 = scmp.ne.s32.totalorder %s1928_s9, %s2478_s15  ;;  %p2483_p9 = scmp.lt.s32.totalorder %s1928_s9, %s3086_s8 }
 0x388   : > { %p2484_p11 = scmp.lt.s32.totalorder %s2482_s21, %s2478_s15 }
 0x389   : > { %p2480_p6 = pnand %p2479_p7, %p2691_p13 }
 0x38a   : > { %p2485_p12 = por %p2484_p11, %p2483_p9 }
 0x38b   : > { %p2481_p4 = pneg %p2480_p6 }
 0x38d   : > { %p2486_p1 = pnand %p2485_p12, %p2481_p4 }
 0x38f   : > { %2489 = shalt.err (!%p2486_p1)
}
 0x390   : > { %2337 = dma.vmem_to_hbm [thread:$0]  (%p2691_p13), %s1931_s16, 128, %s1928_s9, %s1917_s25  }
 0x391 PF: > { %s3108_s20 = sld [smem:[#allocation12_spill]]  ;;  %p3111_p10 = scmp.ge.s32.totalorder %s2548_s10, 2 }
 0x392   : > { %s3109_s11 = sld [smem:[#allocation14_spill]] }
 0x397   : > { %s1942_s24 = sand.u32 1, %s3108_s20  }
 0x398   : > { %p3110_p8 = scmp.ne.s32.totalorder %s3109_s11, 0  ;;  %s1943_s12 = scalar_lea.sflag [#allocation5], %s1942_s24 }
 0x39a   : > { %p2348_p0 = pnand %p3111_p10, %p3110_p8 }
 0x39c   : > { %p2349_p2 = pneg %p2348_p0 }
 0x39e   : > { %2523 = dma.done.wait (%p2349_p2), %s1943_s12, 128  }
 0x39f   : > { %2525 = vsyncadd (%p2349_p2), %s1943_s12, 4294967168  ;;  %s25_s10 = sadd.s32 1, %s2548_s10   ;;  %s3112_s30 = sld [smem:[#allocation13_spill]] }
 0x3a0   : > { %p22_p3 = scmp.ge.s32.totalorder %s25_s10, 4   ;;  %s3113_s9 = sld [smem:[#allocation15_spill]] }
 0x3a1   : > { %s3114_s27 = smov %s2532_s28  ;;  %s3115_s28 = smov %s2536_s29 }
 0x3a2   : > { %s3116_s29 = smov %s2700_s23  ;;  %24 = sbr.rel (!%p22_p3) target bundleno = 9 (0x9), region = 109 }
 0x3a7   :  { %1948 = vsyncpa [#allocation4], 1 }
 0x3a8   :  { %1950 = vsyncpa [#allocation4 + $0x1], 1 }
 0x3a9   :  { %1951 = vsyncpa [#allocation7], 1 }
 0x3aa   :  { %1952 = vsyncpa [#allocation5], 1 }
 0x3ab   :  { %1954 = vsyncpa [#allocation5 + $0x1], 1 }

</bundles_post_ra>
